<compile_context>
chip_gen: v6e
topology: v6e:2x2x1
jax: 0.10.0
libtpu: 0.0.40
codegen_flags: <defaults>
</compile_context>

<pallas_src>
import functools

import jax
import jax.numpy as jnp
from jax import lax
from jax.experimental import pallas as pl
from jax.experimental.pallas import tpu as pltpu

LN_EPS = 1e-5    # nn.LayerNorm default eps
VEC_EPS = 1e-8   # GCPLayerNorm vector-norm / safe_norm eps


def _round_up(x, m):
    return ((x + m - 1) // m) * m


# ----------------------------- Pallas kernel ---------------------------------
def _gcp_embed_kernel(
    s_ref, v_ref,                         # [TB,S_in] bf16, [TB,3*M_in] bf16 (xyz interleaved)
    ln_w_ref, ln_b_ref,                   # LayerNorm affine: [1,S_in]
    ssum_ref,                             # [3*M_in, M_in]  (groups-of-3 lane summer)
    w_down3_ref,                          # [3*M_in, 3*H]   (xyz-fused vector_down)
    w_so_s_ref, w_so_v_ref, b_so_ref,     # scalar_out split: [S_in,S_out],[H,S_out],[1,S_out]
    w_up3_ref,                            # [3*H, 3*V_out]  (xyz-fused vector_up, interleaved out)
    w_gate_ref, b_gate_ref,               # vector_out_scale: [S_out,V_out],[1,V_out]
    rrep_ref,                             # [V_out, 3*V_out] (gate -> interleaved broadcast)
    so_ref, vo_ref,                       # outputs: [TB,S_out] bf16, [TB,3*V_out] bf16
    *, use_silu: bool,
):
    f32 = jnp.float32
    s = s_ref[...].astype(f32)                               # [TB, S_in]
    v = v_ref[...].astype(f32)                               # [TB, 3*M_in]
    H = w_so_v_ref.shape[0]

    # ---- GCPLayerNorm: scalar LayerNorm ----
    mu = jnp.mean(s, axis=-1, keepdims=True)
    var = jnp.mean(jnp.square(s - mu), axis=-1, keepdims=True)
    s_n = (s - mu) * lax.rsqrt(var + LN_EPS)
    s_n = s_n * ln_w_ref[...].astype(f32) + ln_b_ref[...].astype(f32)

    # ---- GCPLayerNorm: vector norm  v / sqrt(mean_ch(clamp(|v|^2, eps))) ----
    ch_sq = jnp.dot(v * v, ssum_ref[...].astype(f32),
                    preferred_element_type=f32)              # [TB, M_in]  (sum over xyz)
    ch_sq = jnp.maximum(ch_sq, VEC_EPS)
    vec_scale = lax.rsqrt(jnp.mean(ch_sq, axis=-1, keepdims=True))  # [TB, 1]
    v_n = v * vec_scale

    # ---- GCP: vector_down (no bias), xyz fused into one MXU pass ----
    vh = jnp.dot(v_n, w_down3_ref[...].astype(f32),
                 preferred_element_type=f32)                 # [TB, 3*H] component-major
    vx, vy, vz = vh[:, 0:H], vh[:, H:2 * H], vh[:, 2 * H:3 * H]
    vnorm = jnp.sqrt(vx * vx + vy * vy + vz * vz + VEC_EPS)  # safe_norm over xyz  [TB, H]

    # ---- GCP: scalar_out(cat([s_n, vnorm], -1)) (concat folded into split matmul) ----
    scal = (jnp.dot(s_n, w_so_s_ref[...].astype(f32), preferred_element_type=f32)
            + jnp.dot(vnorm, w_so_v_ref[...].astype(f32), preferred_element_type=f32)
            + b_so_ref[...].astype(f32))                     # [TB, S_out]
    act = jax.nn.silu(scal) if use_silu else scal            # scalar nonlinearity

    # ---- GCP: vector gate + vector_up (xyz fused, single store) ----
    gate = jax.nn.sigmoid(
        jnp.dot(act, w_gate_ref[...].astype(f32), preferred_element_type=f32)
        + b_gate_ref[...].astype(f32))                       # [TB, V_out]
    gate_i = jnp.dot(gate, rrep_ref[...].astype(f32),
                     preferred_element_type=f32)             # [TB, 3*V_out] interleaved
    vo = jnp.dot(vh, w_up3_ref[...].astype(f32),
                 preferred_element_type=f32) * gate_i        # [TB, 3*V_out] interleaved

    so_ref[...] = act.astype(so_ref.dtype)
    vo_ref[...] = vo.astype(vo_ref.dtype)


# --------------------------- host-side weight fusion ---------------------------
def _expand_params(p, io_dtype):
    """Build xyz-fused / interleaved weight variants (tiny, built once per call)."""
    M_in, H = p["w_down"].shape
    _, V_out = p["w_up"].shape
    eye3 = jnp.eye(3, dtype=jnp.float32)
    ones3 = jnp.ones((3,), jnp.float32)
    # interleaved-xyz input (m*3+c) -> component-major hidden (c*H+h)
    w_down3 = jnp.einsum("cd,mh->mcdh", eye3, p["w_down"]).reshape(3 * M_in, 3 * H)
    # component-major hidden (c*H+h) -> interleaved-xyz output (o*3+c)
    w_up3 = jnp.einsum("cd,ho->chod", eye3, p["w_up"]).reshape(3 * H, V_out * 3)
    # per-channel |v|^2 from the interleaved layout: sums lane groups of 3
    s_sum = jnp.einsum("mk,c->mck", jnp.eye(M_in, dtype=jnp.float32), ones3
                       ).reshape(3 * M_in, M_in)
    # gate [V_out] -> interleaved [3*V_out] broadcast, done on the MXU
    r_rep = jnp.einsum("op,c->opc", jnp.eye(V_out, dtype=jnp.float32), ones3
                       ).reshape(V_out, 3 * V_out)
    out = {
        "ln_w": p["ln_w"], "ln_b": p["ln_b"],
        "s_sum": s_sum, "w_down3": w_down3,
        "w_so_s": p["w_so_s"], "w_so_v": p["w_so_v"], "b_so": p["b_so"],
        "w_up3": w_up3, "w_gate": p["w_gate"], "b_gate": p["b_gate"],
        "r_rep": r_rep,
    }
    return {k: v.astype(io_dtype) for k, v in out.items()}


# ------------------------------- wrapper --------------------------------------
def run_gcp_branch(s, v_bm3, p, *, use_silu, max_tile=1024):
    """s: [B, S_in] f32,  v_bm3: [B, M_in, 3] f32 (PyTorch layout)."""
    B, S_in = s.shape
    M_in = v_bm3.shape[1]
    H, V_out = p["w_up"].shape
    S_out = p["w_so_s"].shape[1]
    io_dt = jnp.bfloat16

    # [B, M_in, 3] -> [B, 3*M_in] interleaved xyz: a free reshape, no HBM transpose.
    v = v_bm3.reshape(B, M_in * 3)

    tile = min(max_tile, _round_up(B, 8))
    grid = pl.cdiv(B, tile)
    B_pad = grid * tile
    if B_pad != B:
        s = jnp.pad(s, ((0, B_pad - B), (0, 0)))
        v = jnp.pad(v, ((0, B_pad - B), (0, 0)))
    s = s.astype(io_dt)
    v = v.astype(io_dt)

    wp = _expand_params(p, io_dt)

    def full(arr):
        shp = arr.shape
        return pl.BlockSpec(shp, lambda i, _s=shp: (0,) * len(_s))

    kernel = functools.partial(_gcp_embed_kernel, use_silu=use_silu)
    so, vo = pl.pallas_call(
        kernel,
        out_shape=(jax.ShapeDtypeStruct((B_pad, S_out), io_dt),
                   jax.ShapeDtypeStruct((B_pad, 3 * V_out), io_dt)),
        grid_spec=pltpu.PrefetchScalarGridSpec(
            num_scalar_prefetch=0,
            grid=(grid,),
            in_specs=[
                pl.BlockSpec((tile, S_in), lambda i: (i, 0)),
                pl.BlockSpec((tile, 3 * M_in), lambda i: (i, 0)),
                full(wp["ln_w"]), full(wp["ln_b"]),
                full(wp["s_sum"]), full(wp["w_down3"]),
                full(wp["w_so_s"]), full(wp["w_so_v"]), full(wp["b_so"]),
                full(wp["w_up3"]), full(wp["w_gate"]), full(wp["b_gate"]),
                full(wp["r_rep"]),
            ],
            out_specs=[
                pl.BlockSpec((tile, S_out), lambda i: (i, 0)),
                pl.BlockSpec((tile, 3 * V_out), lambda i: (i, 0)),
            ],
        ),
        compiler_params=pltpu.CompilerParams(dimension_semantics=("parallel",)),
    )(s, v, wp["ln_w"], wp["ln_b"], wp["s_sum"], wp["w_down3"],
      wp["w_so_s"], wp["w_so_v"], wp["b_so"],
      wp["w_up3"], wp["w_gate"], wp["b_gate"], wp["r_rep"])

    so = so[:B].astype(jnp.float32)                                   # [B, S_out]
    vo = vo[:B].astype(jnp.float32).reshape(B, V_out, 3)              # free reshape (interleaved)
    return so, vo


# ------------------------- pure-JAX reference (same math) ---------------------
def ref_gcp_branch(s, v, p, *, use_silu):
    mu = jnp.mean(s, -1, keepdims=True)
    var = jnp.mean((s - mu) ** 2, -1, keepdims=True)
    s_n = (s - mu) / jnp.sqrt(var + LN_EPS) * p["ln_w"] + p["ln_b"]
    sq = jnp.maximum(jnp.sum(v * v, -1, keepdims=True), VEC_EPS)
    v_n = v / jnp.sqrt(jnp.mean(sq, -2, keepdims=True))
    v_pre = jnp.swapaxes(v_n, -1, -2)                       # [B,3,M]
    vh = jnp.einsum("bim,mh->bih", v_pre, p["w_down"])      # [B,3,H]
    vnorm = jnp.sqrt(jnp.sum(vh * vh, -2) + VEC_EPS)        # [B,H]
    scal = s_n @ p["w_so_s"] + vnorm @ p["w_so_v"] + p["b_so"]
    act = jax.nn.silu(scal) if use_silu else scal
    gate = jax.nn.sigmoid(act @ p["w_gate"] + p["b_gate"])
    vout = jnp.einsum("bih,ho->bio", vh, p["w_up"])         # [B,3,V_out]
    vout = jnp.swapaxes(vout, -1, -2) * gate[..., None]     # [B,V_out,3]
    return act, vout


# ---------------------------------- main ---------------------------------------
def make_params(key, s_in, m_in, s_out, v_out):
    ks = jax.random.split(key, 5)
    scale = 0.2
    return {
        "ln_w": jnp.ones((1, s_in), jnp.float32),
        "ln_b": jnp.zeros((1, s_in), jnp.float32),
        "w_down": scale * jax.random.normal(ks[0], (m_in, v_out), jnp.float32),
        "w_so_s": scale * jax.random.normal(ks[1], (s_in, s_out), jnp.float32),
        "w_so_v": scale * jax.random.normal(ks[2], (v_out, s_out), jnp.float32),
        "b_so": jnp.zeros((1, s_out), jnp.float32),
        "w_up": scale * jax.random.normal(ks[3], (v_out, v_out), jnp.float32),
        "w_gate": scale * jax.random.normal(ks[4], (s_out, v_out), jnp.float32),
        "b_gate": jnp.zeros((1, v_out), jnp.float32),
    }


if __name__ == "__main__":
    key = jax.random.PRNGKey(0)
    k = jax.random.split(key, 8)

    # sizes
    NUM_ATOM_TYPES = 8
    N_NODES, N_EDGES = 8, 20          # edge count NOT a multiple of 8 -> exercises pad + slice
    M_IN, X_IN = 4, 4                 # chi / xi input vector channels
    H_HID, CHI_HID = 32, 8            # node hidden dims (scalar, vector)
    E_HID, XI_HID = 32, 8             # edge hidden dims (scalar, vector)
    E_IN = 8                          # edge scalar input dim

    # batch (deterministic)
    h = jax.random.randint(k[0], (N_NODES,), 0, NUM_ATOM_TYPES, jnp.int32)
    chi = jax.random.normal(k[1], (N_NODES, M_IN, 3), jnp.float32)
    e = jax.random.normal(k[2], (N_EDGES, E_IN), jnp.float32)
    xi = jax.random.normal(k[3], (N_EDGES, X_IN, 3), jnp.float32)
    edge_index = jax.random.randint(k[4], (2, N_EDGES), 0, N_NODES, jnp.int32)  # unused (ablate_frame_updates)
    f_ij = jax.random.normal(k[5], (N_EDGES, 3, 3), jnp.float32)                # unused (ablate_frame_updates)

    # parameters
    atom_table = jax.random.normal(k[6], (NUM_ATOM_TYPES, NUM_ATOM_TYPES), jnp.float32)
    node_params = make_params(jax.random.PRNGKey(1), NUM_ATOM_TYPES, M_IN, H_HID, CHI_HID)
    edge_params = make_params(jax.random.PRNGKey(2), E_IN, X_IN, E_HID, XI_HID)

    # atom embedding (gather glue, as in nn.Embedding)
    node_s_in = atom_table[h]                                  # [N_NODES, NUM_ATOM_TYPES]

    # node GCP: nonlinearities = (None, None);  edge GCP: ('silu', 'silu')
    node_s, node_v = run_gcp_branch(node_s_in, chi, node_params, use_silu=False)
    edge_s, edge_v = run_gcp_branch(e, xi, edge_params, use_silu=True)
    jax.block_until_ready((node_s, node_v, edge_s, edge_v))

    # sanity check against pure-JAX reference (same bf16-quantized operands, f32 math)
    q = lambda x: x.astype(jnp.bfloat16).astype(jnp.float32)
    qp = lambda prm: {kk: q(vv) for kk, vv in prm.items()}
    rn_s, rn_v = ref_gcp_branch(q(node_s_in), q(chi), qp(node_params), use_silu=False)
    re_s, re_v = ref_gcp_branch(q(e), q(xi), qp(edge_params), use_silu=True)

    assert node_s.shape == (N_NODES, H_HID) and node_v.shape == (N_NODES, CHI_HID, 3)
    assert edge_s.shape == (N_EDGES, E_HID) and edge_v.shape == (N_EDGES, XI_HID, 3)
    assert jnp.allclose(node_s, rn_s, atol=2e-2, rtol=2e-2)
    assert jnp.allclose(node_v, rn_v, atol=2e-2, rtol=2e-2)
    assert jnp.allclose(edge_s, re_s, atol=2e-2, rtol=2e-2)
    assert jnp.allclose(edge_v, re_v, atol=2e-2, rtol=2e-2)

    print("KERNEL_OK")
</pallas_src>

<mosaic_0001>
module attributes {stable_mosaic.version = 11 : i64} {
  func.func @_gcp_embed_kernel(%arg0: i32, %arg1: memref<8x8xbf16, #tpu.memory_space<vmem>>, %arg2: memref<8x12xbf16, #tpu.memory_space<vmem>>, %arg3: memref<1x8xbf16, #tpu.memory_space<vmem>>, %arg4: memref<1x8xbf16, #tpu.memory_space<vmem>>, %arg5: memref<12x4xbf16, #tpu.memory_space<vmem>>, %arg6: memref<12x24xbf16, #tpu.memory_space<vmem>>, %arg7: memref<8x32xbf16, #tpu.memory_space<vmem>>, %arg8: memref<8x32xbf16, #tpu.memory_space<vmem>>, %arg9: memref<1x32xbf16, #tpu.memory_space<vmem>>, %arg10: memref<24x24xbf16, #tpu.memory_space<vmem>>, %arg11: memref<32x8xbf16, #tpu.memory_space<vmem>>, %arg12: memref<1x8xbf16, #tpu.memory_space<vmem>>, %arg13: memref<8x24xbf16, #tpu.memory_space<vmem>>, %arg14: memref<8x32xbf16, #tpu.memory_space<vmem>>, %arg15: memref<8x24xbf16, #tpu.memory_space<vmem>>) attributes {dimension_semantics = [#tpu.dimension_semantics<parallel>], iteration_bounds = array<i64: 1>, scalar_prefetch = 0 : i64, scratch_operands = 0 : i64, tpu.core_type = #tpu.core_type<tc>, window_params = [{transform_indices = @transform_0, window_bounds = array<i64: 8, 8>}, {transform_indices = @transform_1, window_bounds = array<i64: 8, 12>}, {pipeline_mode = #tpu.pipeline_mode<synchronous>, transform_indices = @transform_2, window_bounds = array<i64: 1, 8>}, {pipeline_mode = #tpu.pipeline_mode<synchronous>, transform_indices = @transform_3, window_bounds = array<i64: 1, 8>}, {pipeline_mode = #tpu.pipeline_mode<synchronous>, transform_indices = @transform_4, window_bounds = array<i64: 12, 4>}, {pipeline_mode = #tpu.pipeline_mode<synchronous>, transform_indices = @transform_5, window_bounds = array<i64: 12, 24>}, {pipeline_mode = #tpu.pipeline_mode<synchronous>, transform_indices = @transform_6, window_bounds = array<i64: 8, 32>}, {pipeline_mode = #tpu.pipeline_mode<synchronous>, transform_indices = @transform_7, window_bounds = array<i64: 8, 32>}, {pipeline_mode = #tpu.pipeline_mode<synchronous>, transform_indices = @transform_8, window_bounds = array<i64: 1, 32>}, {pipeline_mode = #tpu.pipeline_mode<synchronous>, transform_indices = @transform_9, window_bounds = array<i64: 24, 24>}, {pipeline_mode = #tpu.pipeline_mode<synchronous>, transform_indices = @transform_10, window_bounds = array<i64: 32, 8>}, {pipeline_mode = #tpu.pipeline_mode<synchronous>, transform_indices = @transform_11, window_bounds = array<i64: 1, 8>}, {pipeline_mode = #tpu.pipeline_mode<synchronous>, transform_indices = @transform_12, window_bounds = array<i64: 8, 24>}, {transform_indices = @transform_13, window_bounds = array<i64: 8, 32>}, {transform_indices = @transform_14, window_bounds = array<i64: 8, 24>}]} {
    %c0 = arith.constant 0 : index
    %c0_0 = arith.constant 0 : index
    %0 = vector.load %arg1[%c0, %c0_0] : memref<8x8xbf16, #tpu.memory_space<vmem>>, vector<8x8xbf16>
    %1 = arith.extf %0 : vector<8x8xbf16> to vector<8x8xf32>
    %c0_1 = arith.constant 0 : index
    %c0_2 = arith.constant 0 : index
    %2 = vector.load %arg2[%c0_1, %c0_2] : memref<8x12xbf16, #tpu.memory_space<vmem>>, vector<8x12xbf16>
    %3 = arith.extf %2 : vector<8x12xbf16> to vector<8x12xf32>
    %cst = arith.constant dense<0.000000e+00> : vector<8xf32>
    %4 = vector.multi_reduction <add>, %1, %cst [1] : vector<8x8xf32> to vector<8xf32>
    %5 = vector.shape_cast %4 : vector<8xf32> to vector<8x1xf32>
    %cst_3 = arith.constant 8.000000e+00 : f32
    %6 = vector.broadcast %cst_3 : f32 to vector<8x1xf32>
    %7 = arith.divf %5, %6 : vector<8x1xf32>
    %8 = vector.broadcast %7 : vector<8x1xf32> to vector<8x8xf32>
    %9 = arith.subf %1, %8 : vector<8x8xf32>
    %10 = arith.mulf %9, %9 : vector<8x8xf32>
    %cst_4 = arith.constant dense<0.000000e+00> : vector<8xf32>
    %11 = vector.multi_reduction <add>, %10, %cst_4 [1] : vector<8x8xf32> to vector<8xf32>
    %12 = vector.shape_cast %11 : vector<8xf32> to vector<8x1xf32>
    %cst_5 = arith.constant 8.000000e+00 : f32
    %13 = vector.broadcast %cst_5 : f32 to vector<8x1xf32>
    %14 = arith.divf %12, %13 : vector<8x1xf32>
    %15 = vector.broadcast %7 : vector<8x1xf32> to vector<8x8xf32>
    %16 = arith.subf %1, %15 : vector<8x8xf32>
    %cst_6 = arith.constant 9.99999974E-6 : f32
    %17 = vector.broadcast %cst_6 : f32 to vector<8x1xf32>
    %18 = arith.addf %14, %17 : vector<8x1xf32>
    %19 = math.rsqrt %18 : vector<8x1xf32>
    %20 = vector.broadcast %19 : vector<8x1xf32> to vector<8x8xf32>
    %21 = arith.mulf %16, %20 : vector<8x8xf32>
    %c0_7 = arith.constant 0 : index
    %c0_8 = arith.constant 0 : index
    %22 = vector.load %arg3[%c0_7, %c0_8] : memref<1x8xbf16, #tpu.memory_space<vmem>>, vector<1x8xbf16>
    %23 = arith.extf %22 : vector<1x8xbf16> to vector<1x8xf32>
    %24 = vector.broadcast %23 : vector<1x8xf32> to vector<8x8xf32>
    %25 = arith.mulf %21, %24 : vector<8x8xf32>
    %c0_9 = arith.constant 0 : index
    %c0_10 = arith.constant 0 : index
    %26 = vector.load %arg4[%c0_9, %c0_10] : memref<1x8xbf16, #tpu.memory_space<vmem>>, vector<1x8xbf16>
    %27 = arith.extf %26 : vector<1x8xbf16> to vector<1x8xf32>
    %28 = vector.broadcast %27 : vector<1x8xf32> to vector<8x8xf32>
    %29 = arith.addf %25, %28 : vector<8x8xf32>
    %30 = arith.mulf %3, %3 : vector<8x12xf32>
    %c0_11 = arith.constant 0 : index
    %c0_12 = arith.constant 0 : index
    %31 = vector.load %arg5[%c0_11, %c0_12] : memref<12x4xbf16, #tpu.memory_space<vmem>>, vector<12x4xbf16>
    %32 = arith.extf %31 : vector<12x4xbf16> to vector<12x4xf32>
    %cst_13 = arith.constant dense<0.000000e+00> : vector<8x4xf32>
    %33 = tpu.matmul %30, %32, %cst_13 {dimension_numbers = #tpu.dot_dimension_numbers<[1], [0], [0], [1], [0, 0, 1, 1], [], []>} : vector<8x12xf32>, vector<12x4xf32>, vector<8x4xf32> -> vector<8x4xf32>
    %cst_14 = arith.constant 9.99999993E-9 : f32
    %34 = vector.broadcast %cst_14 : f32 to vector<8x4xf32>
    %35 = arith.maximumf %33, %34 : vector<8x4xf32>
    %cst_15 = arith.constant dense<0.000000e+00> : vector<8xf32>
    %36 = vector.multi_reduction <add>, %35, %cst_15 [1] : vector<8x4xf32> to vector<8xf32>
    %37 = vector.shape_cast %36 : vector<8xf32> to vector<8x1xf32>
    %cst_16 = arith.constant 4.000000e+00 : f32
    %38 = vector.broadcast %cst_16 : f32 to vector<8x1xf32>
    %39 = arith.divf %37, %38 : vector<8x1xf32>
    %40 = math.rsqrt %39 : vector<8x1xf32>
    %41 = vector.broadcast %40 : vector<8x1xf32> to vector<8x12xf32>
    %42 = arith.mulf %3, %41 : vector<8x12xf32>
    %c0_17 = arith.constant 0 : index
    %c0_18 = arith.constant 0 : index
    %43 = vector.load %arg6[%c0_17, %c0_18] : memref<12x24xbf16, #tpu.memory_space<vmem>>, vector<12x24xbf16>
    %44 = arith.extf %43 : vector<12x24xbf16> to vector<12x24xf32>
    %cst_19 = arith.constant dense<0.000000e+00> : vector<8x24xf32>
    %45 = tpu.matmul %42, %44, %cst_19 {dimension_numbers = #tpu.dot_dimension_numbers<[1], [0], [0], [1], [0, 0, 1, 1], [], []>} : vector<8x12xf32>, vector<12x24xf32>, vector<8x24xf32> -> vector<8x24xf32>
    %46 = vector.extract_strided_slice %45 {offsets = [0, 0], sizes = [8, 8], strides = [1, 1]} : vector<8x24xf32> to vector<8x8xf32>
    %47 = vector.extract_strided_slice %45 {offsets = [0, 8], sizes = [8, 8], strides = [1, 1]} : vector<8x24xf32> to vector<8x8xf32>
    %48 = vector.extract_strided_slice %45 {offsets = [0, 16], sizes = [8, 8], strides = [1, 1]} : vector<8x24xf32> to vector<8x8xf32>
    %49 = arith.mulf %46, %46 : vector<8x8xf32>
    %50 = arith.mulf %47, %47 : vector<8x8xf32>
    %51 = arith.addf %49, %50 : vector<8x8xf32>
    %52 = arith.mulf %48, %48 : vector<8x8xf32>
    %53 = arith.addf %51, %52 : vector<8x8xf32>
    %cst_20 = arith.constant 9.99999993E-9 : f32
    %54 = vector.broadcast %cst_20 : f32 to vector<8x8xf32>
    %55 = arith.addf %53, %54 : vector<8x8xf32>
    %56 = math.sqrt %55 : vector<8x8xf32>
    %c0_21 = arith.constant 0 : index
    %c0_22 = arith.constant 0 : index
    %57 = vector.load %arg7[%c0_21, %c0_22] : memref<8x32xbf16, #tpu.memory_space<vmem>>, vector<8x32xbf16>
    %58 = arith.extf %57 : vector<8x32xbf16> to vector<8x32xf32>
    %cst_23 = arith.constant dense<0.000000e+00> : vector<8x32xf32>
    %59 = tpu.matmul %29, %58, %cst_23 {dimension_numbers = #tpu.dot_dimension_numbers<[1], [0], [0], [1], [0, 0, 1, 1], [], []>} : vector<8x8xf32>, vector<8x32xf32>, vector<8x32xf32> -> vector<8x32xf32>
    %c0_24 = arith.constant 0 : index
    %c0_25 = arith.constant 0 : index
    %60 = vector.load %arg8[%c0_24, %c0_25] : memref<8x32xbf16, #tpu.memory_space<vmem>>, vector<8x32xbf16>
    %61 = arith.extf %60 : vector<8x32xbf16> to vector<8x32xf32>
    %cst_26 = arith.constant dense<0.000000e+00> : vector<8x32xf32>
    %62 = tpu.matmul %56, %61, %cst_26 {dimension_numbers = #tpu.dot_dimension_numbers<[1], [0], [0], [1], [0, 0, 1, 1], [], []>} : vector<8x8xf32>, vector<8x32xf32>, vector<8x32xf32> -> vector<8x32xf32>
    %63 = arith.addf %59, %62 : vector<8x32xf32>
    %c0_27 = arith.constant 0 : index
    %c0_28 = arith.constant 0 : index
    %64 = vector.load %arg9[%c0_27, %c0_28] : memref<1x32xbf16, #tpu.memory_space<vmem>>, vector<1x32xbf16>
    %65 = arith.extf %64 : vector<1x32xbf16> to vector<1x32xf32>
    %66 = vector.broadcast %65 : vector<1x32xf32> to vector<8x32xf32>
    %67 = arith.addf %63, %66 : vector<8x32xf32>
    %c0_29 = arith.constant 0 : index
    %c0_30 = arith.constant 0 : index
    %68 = vector.load %arg11[%c0_29, %c0_30] : memref<32x8xbf16, #tpu.memory_space<vmem>>, vector<32x8xbf16>
    %69 = arith.extf %68 : vector<32x8xbf16> to vector<32x8xf32>
    %cst_31 = arith.constant dense<0.000000e+00> : vector<8x8xf32>
    %70 = tpu.matmul %67, %69, %cst_31 {dimension_numbers = #tpu.dot_dimension_numbers<[1], [0], [0], [1], [0, 0, 1, 1], [], []>} : vector<8x32xf32>, vector<32x8xf32>, vector<8x8xf32> -> vector<8x8xf32>
    %c0_32 = arith.constant 0 : index
    %c0_33 = arith.constant 0 : index
    %71 = vector.load %arg12[%c0_32, %c0_33] : memref<1x8xbf16, #tpu.memory_space<vmem>>, vector<1x8xbf16>
    %72 = arith.extf %71 : vector<1x8xbf16> to vector<1x8xf32>
    %73 = vector.broadcast %72 : vector<1x8xf32> to vector<8x8xf32>
    %74 = arith.addf %70, %73 : vector<8x8xf32>
    %75 = arith.negf %74 : vector<8x8xf32>
    %76 = math.exp %75 : vector<8x8xf32>
    %cst_34 = arith.constant 1.000000e+00 : f32
    %77 = vector.broadcast %cst_34 : f32 to vector<8x8xf32>
    %78 = arith.addf %77, %76 : vector<8x8xf32>
    %79 = arith.divf %77, %78 : vector<8x8xf32>
    %c0_35 = arith.constant 0 : index
    %c0_36 = arith.constant 0 : index
    %80 = vector.load %arg13[%c0_35, %c0_36] : memref<8x24xbf16, #tpu.memory_space<vmem>>, vector<8x24xbf16>
    %81 = arith.extf %80 : vector<8x24xbf16> to vector<8x24xf32>
    %cst_37 = arith.constant dense<0.000000e+00> : vector<8x24xf32>
    %82 = tpu.matmul %79, %81, %cst_37 {dimension_numbers = #tpu.dot_dimension_numbers<[1], [0], [0], [1], [0, 0, 1, 1], [], []>} : vector<8x8xf32>, vector<8x24xf32>, vector<8x24xf32> -> vector<8x24xf32>
    %c0_38 = arith.constant 0 : index
    %c0_39 = arith.constant 0 : index
    %83 = vector.load %arg10[%c0_38, %c0_39] : memref<24x24xbf16, #tpu.memory_space<vmem>>, vector<24x24xbf16>
    %84 = arith.extf %83 : vector<24x24xbf16> to vector<24x24xf32>
    %cst_40 = arith.constant dense<0.000000e+00> : vector<8x24xf32>
    %85 = tpu.matmul %45, %84, %cst_40 {dimension_numbers = #tpu.dot_dimension_numbers<[1], [0], [0], [1], [0, 0, 1, 1], [], []>} : vector<8x24xf32>, vector<24x24xf32>, vector<8x24xf32> -> vector<8x24xf32>
    %86 = arith.mulf %85, %82 : vector<8x24xf32>
    %87 = arith.truncf %67 : vector<8x32xf32> to vector<8x32xbf16>
    %c0_41 = arith.constant 0 : index
    %c0_42 = arith.constant 0 : index
    %88 = vector.load %arg14[%c0_41, %c0_42] : memref<8x32xbf16, #tpu.memory_space<vmem>>, vector<8x32xbf16>
    tpu.vector_store %arg14[%c0_41, %c0_42], %87 {strides = array<i32>} : memref<8x32xbf16, #tpu.memory_space<vmem>>, vector<8x32xbf16>,
    %89 = arith.truncf %86 : vector<8x24xf32> to vector<8x24xbf16>
    %c0_43 = arith.constant 0 : index
    %c0_44 = arith.constant 0 : index
    %90 = vector.load %arg15[%c0_43, %c0_44] : memref<8x24xbf16, #tpu.memory_space<vmem>>, vector<8x24xbf16>
    tpu.vector_store %arg15[%c0_43, %c0_44], %89 {strides = array<i32>} : memref<8x24xbf16, #tpu.memory_space<vmem>>, vector<8x24xbf16>,
    return
  }
  func.func @transform_0(%arg0: i32) -> (i32, i32) {
    %c0_i32 = arith.constant 0 : i32
    %c0_i32_0 = arith.constant 0 : i32
    return %arg0, %c0_i32 : i32, i32
  }
  func.func @transform_1(%arg0: i32) -> (i32, i32) {
    %c0_i32 = arith.constant 0 : i32
    %c0_i32_0 = arith.constant 0 : i32
    return %arg0, %c0_i32 : i32, i32
  }
  func.func @transform_2(%arg0: i32) -> (i32, i32) {
    %c0_i32 = arith.constant 0 : i32
    %c0_i32_0 = arith.constant 0 : i32
    %c0_i32_1 = arith.constant 0 : i32
    return %c0_i32, %c0_i32_0 : i32, i32
  }
  func.func @transform_3(%arg0: i32) -> (i32, i32) {
    %c0_i32 = arith.constant 0 : i32
    %c0_i32_0 = arith.constant 0 : i32
    %c0_i32_1 = arith.constant 0 : i32
    return %c0_i32, %c0_i32_0 : i32, i32
  }
  func.func @transform_4(%arg0: i32) -> (i32, i32) {
    %c0_i32 = arith.constant 0 : i32
    %c0_i32_0 = arith.constant 0 : i32
    %c0_i32_1 = arith.constant 0 : i32
    return %c0_i32, %c0_i32_0 : i32, i32
  }
  func.func @transform_5(%arg0: i32) -> (i32, i32) {
    %c0_i32 = arith.constant 0 : i32
    %c0_i32_0 = arith.constant 0 : i32
    %c0_i32_1 = arith.constant 0 : i32
    return %c0_i32, %c0_i32_0 : i32, i32
  }
  func.func @transform_6(%arg0: i32) -> (i32, i32) {
    %c0_i32 = arith.constant 0 : i32
    %c0_i32_0 = arith.constant 0 : i32
    %c0_i32_1 = arith.constant 0 : i32
    return %c0_i32, %c0_i32_0 : i32, i32
  }
  func.func @transform_7(%arg0: i32) -> (i32, i32) {
    %c0_i32 = arith.constant 0 : i32
    %c0_i32_0 = arith.constant 0 : i32
    %c0_i32_1 = arith.constant 0 : i32
    return %c0_i32, %c0_i32_0 : i32, i32
  }
  func.func @transform_8(%arg0: i32) -> (i32, i32) {
    %c0_i32 = arith.constant 0 : i32
    %c0_i32_0 = arith.constant 0 : i32
    %c0_i32_1 = arith.constant 0 : i32
    return %c0_i32, %c0_i32_0 : i32, i32
  }
  func.func @transform_9(%arg0: i32) -> (i32, i32) {
    %c0_i32 = arith.constant 0 : i32
    %c0_i32_0 = arith.constant 0 : i32
    %c0_i32_1 = arith.constant 0 : i32
    return %c0_i32, %c0_i32_0 : i32, i32
  }
  func.func @transform_10(%arg0: i32) -> (i32, i32) {
    %c0_i32 = arith.constant 0 : i32
    %c0_i32_0 = arith.constant 0 : i32
    %c0_i32_1 = arith.constant 0 : i32
    return %c0_i32, %c0_i32_0 : i32, i32
  }
  func.func @transform_11(%arg0: i32) -> (i32, i32) {
    %c0_i32 = arith.constant 0 : i32
    %c0_i32_0 = arith.constant 0 : i32
    %c0_i32_1 = arith.constant 0 : i32
    return %c0_i32, %c0_i32_0 : i32, i32
  }
  func.func @transform_12(%arg0: i32) -> (i32, i32) {
    %c0_i32 = arith.constant 0 : i32
    %c0_i32_0 = arith.constant 0 : i32
    %c0_i32_1 = arith.constant 0 : i32
    return %c0_i32, %c0_i32_0 : i32, i32
  }
  func.func @transform_13(%arg0: i32) -> (i32, i32) {
    %c0_i32 = arith.constant 0 : i32
    %c0_i32_0 = arith.constant 0 : i32
    return %arg0, %c0_i32 : i32, i32
  }
  func.func @transform_14(%arg0: i32) -> (i32, i32) {
    %c0_i32 = arith.constant 0 : i32
    %c0_i32_0 = arith.constant 0 : i32
    return %arg0, %c0_i32 : i32, i32
  }
}

</mosaic_0001>

<bundles_post_ra>
// kernel: tpu_custom_call.1
= control target key start
LH: loop header
LB: loop body
LE: loop exit
PB: predicated region body
PF: predicated region fallthrough
CT: control target
= control target key end

     0   :  { %20 = vsyncpa [#allocation3], 0  ;;  %s1158_s0 = inlined_call_operand.vmem [shape: bf16[8,8], index: 0, kind: input, shape index: {}]   ;;  %s1159_s1 = inlined_call_operand.hbm [shape: bf16[8,12], index: 1, kind: input, shape index: {}]   ;;  %s1160_s2 = inlined_call_operand.hbm [shape: bf16[1,8], index: 2, kind: input, shape index: {}]   ;;  %s1161_s3 = inlined_call_operand.hbm [shape: bf16[1,8], index: 3, kind: input, shape index: {}]   ;;  %s1162_s4 = inlined_call_operand.vmem [shape: bf16[12,4], index: 4, kind: input, shape index: {}]   ;;  %s1163_s5 = inlined_call_operand.vmem [shape: bf16[12,24], index: 5, kind: input, shape index: {}]   ;;  %s1164_s6 = inlined_call_operand.vmem [shape: bf16[8,32], index: 6, kind: input, shape index: {}]   ;;  %s1165_s7 = inlined_call_operand.vmem [shape: bf16[8,32], index: 7, kind: input, shape index: {}]   ;;  %s1166_s8 = inlined_call_operand.vmem [shape: bf16[1,32], index: 8, kind: input, shape index: {}]   ;;  %s1167_s9 = inlined_call_operand.vmem [shape: bf16[24,24], index: 9, kind: input, shape index: {}]   ;;  %s1168_s10 = inlined_call_operand.vmem [shape: bf16[32,8], index: 10, kind: input, shape index: {}]   ;;  %s1169_s11 = inlined_call_operand.vmem [shape: bf16[1,8], index: 11, kind: input, shape index: {}]   ;;  %s1170_s12 = inlined_call_operand.vmem [shape: bf16[8,24], index: 12, kind: input, shape index: {}]   ;;  %s1171_s13 = inlined_call_operand.hbm [shape: bf16[8,32], index: 13, kind: output, shape index: {0}]   ;;  %s1172_s14 = inlined_call_operand.hbm [shape: bf16[8,24], index: 14, kind: output, shape index: {1}]  }
   0x1   :  { %21 = vsyncpa [#allocation6], 0 }
   0x2   :  { %22 = vsyncpa [#allocation4], 0 }
   0x3   :  { %23 = vsyncpa [#allocation10], 0  ;;  %s969_s29 = smov [#allocation5]   ;;  %s970_s15 = smov [#allocation2]  }
   0x4   :  { %s42_s30 = sshll.u32 %s969_s29, 4  ;;  %s32_s16 = sshll.u32 %s970_s15, 4  ;;  %s43_s30 = int_to_ptr.vmem [resolvable:$true] %s42_s30  ;;  %s33_s16 = int_to_ptr.vmem [resolvable:$true] %s32_s16 }
   0x5   :  { %s869_s17 = scalar_lea.vmem %s43_s30, 16  ;;  %s873_s18 = scalar_lea.vmem %s43_s30, 32 }
   0x6   :  { %p870_p0 = scmp.ne.s32.totalorder %s43_s30, %s869_s17  ;;  %p874_p1 = scmp.lt.s32.totalorder %s43_s30, %s43_s30 }
   0x7   :  { %p875_p2 = scmp.lt.s32.totalorder %s873_s18, %s869_s17 }
   0x9   :  { %p876_p3 = por %p875_p2, %p874_p1 }
   0xb   :  { %p877_p4 = pnand %p876_p3, %p870_p0 }
   0xd   :  { %880 = shalt.err (!%p877_p4)
}
   0xe   :  { %45 = dma.hbm_to_vmem [thread:$0]  %s1160_s2, 16, %s43_s30, [#allocation6]  }
   0xf   :  { %s889_s21 = scalar_lea.vmem %s33_s16, 64  ;;  %p894_p6 = scmp.lt.s32.totalorder %s33_s16, %s33_s16 }
  0x10   :  { %p890_p5 = scmp.ne.s32.totalorder %s33_s16, %s889_s21  ;;  %p895_p7 = scmp.lt.s32.totalorder %s889_s21, %s889_s21 }
  0x12   :  { %p896_p8 = por %p895_p7, %p894_p6 }
  0x14   :  { %p897_p9 = pnand %p896_p8, %p890_p5 }
  0x16   :  { %900 = shalt.err (!%p897_p9)
}
  0x17   :  { %35 = dma.hbm_to_vmem [thread:$0]  %s1159_s1, 64, %s33_s16, [#allocation3]  }
  0x18   :  { %s971_s24 = smov [#allocation7]  }
  0x19   :  { %s52_s25 = sshll.u32 %s971_s24, 4  ;;  %s53_s25 = int_to_ptr.vmem [resolvable:$true] %s52_s25 }
  0x1a   :  { %s909_s26 = scalar_lea.vmem %s53_s25, 16  ;;  %s913_s27 = scalar_lea.vmem %s53_s25, 32 }
  0x1b   :  { %p910_p10 = scmp.ne.s32.totalorder %s53_s25, %s909_s26  ;;  %p914_p11 = scmp.lt.s32.totalorder %s53_s25, %s53_s25 }
  0x1c   :  { %p915_p12 = scmp.lt.s32.totalorder %s913_s27, %s909_s26 }
  0x1e   :  { %p916_p13 = por %p915_p12, %p914_p11 }
  0x20   :  { %p917_p0 = pnand %p916_p13, %p910_p10 }
  0x22   :  { %920 = shalt.err (!%p917_p0)
}
  0x23   :  { %55 = dma.hbm_to_vmem [thread:$0]  %s1161_s3, 16, %s53_s25, [#allocation6]  }
  0x24   :  { %961 = dma.done.wait [#allocation3], 64  }
  0x25   :  { %962 = vsyncadd [#allocation3], 4294967232 }
  0x26   :  { %963 = dma.done.wait [#allocation6], 32  }
  0x27   :  { %964 = vsyncadd [#allocation6], 4294967264  ;;  %v972_v0 = vmov 0.0   ;;  %vm973_vm0 = vmmov 0   ;;  %vm125_vm1 = vcmask 1043456   ;;  %vm121_vm2 = vcmask 97280  }
  0x28   :  { %793 = vmatprep.subr.mxu0 %v972_v0  ;;  %797 = vmatprep.mubr.msk.f32.mxu0 %vm973_vm0, %v972_v0  ;;  %v118_v1 = vld [vmem:[%s1162_s4 + $0x4] sm:$0x3]  ;;  %v117_v2 = vld [vmem:[%s1162_s4] sm:$0xf]  ;;  %vm200_vm3 = vcmask 31744   ;;  %vm87_vm4 = vcmask 64512   ;;  %v104_v33 = vlaneseq }
  0x29   :  { %800 = vmatprep.subr.mxu1 %v972_v0  ;;  %804 = vmatprep.mubr.msk.f32.mxu1 %vm973_vm0, %v972_v0  ;;  %v85_v3 = vld [vmem:[#allocation2] sm:$0xf]  ;;  %v120_v4 = vunpack.c.l.bf16 %v118_v1  ;;  %v119_v5 = vunpack.c.l.bf16 %v117_v2  ;;  %v209_v15 = vld [vmem:[%s1163_s5 + $0x4] sm:$0x3]  ;;  %v109_v36 = vld [vmem:[#allocation7] sm:$0x1] }
  0x2a   :  { %v86_v6 = vunpack.c.l.bf16 %v85_v3  ;;  %v83_v8 = vld [vmem:[%s1158_s0] sm:$0xf]  ;;  %v211_v17 = vunpack.c.l.bf16 %v209_v15  ;;  %v105_v34 = vshrl.u32 %v104_v33, 7  ;;  %v102_v35 = vld [vmem:[#allocation5] sm:$0x1]  ;;  %v110_v39 = vunpack.c.l.bf16 %v109_v36  ;;  %s974_s21 = smov 112  }
  0x2b   :  { %794 = vmatpush3.msk.msra.mxu0 %vm125_vm1, %v120_v4  ;;  %v84_v11 = vunpack.c.l.bf16 %v83_v8  ;;  %v208_v16 = vld [vmem:[%s1163_s5] sm:$0xf]  ;;  %v103_v37 = vunpack.c.l.bf16 %v102_v35  ;;  %s975_s22 = smov 120   ;;  %v771_v56 = vld [vmem:[%s1168_s10 + $0x8] sm:$0xff]   ;;  %vm477_vm7 = vcmask 261120   ;;  %vm714_vm8 = vcmask 257024  }
  0x2c   :  { %v116_v7 = vmul.f32 %v86_v6, %v86_v6  ;;  %795 = vmatprep.subr.mxu0 %v972_v0  ;;  %v210_v18 = vunpack.c.l.bf16 %v208_v16  ;;  %801 = vmatpush3.msk.msra.mxu1 %vm125_vm1, %v211_v17  ;;  %v306_v28 = vld [vmem:[%s1164_s6] sm:$0xf]  ;;  %v1101_v38 = vsub.s32 0, %v105_v34  ;;  %v766_v60 = vunpack.c.h.bf16 %v771_v56 }
  0x2d   :  { %796 = vmatpush3.msra.mxu0 %v119_v5  ;;  %v88_v14 = vsel %vm87_vm4, %v84_v11, 0.0  ;;  %802 = vmatprep.subr.mxu1 %v972_v0  ;;  %v307_v29 = vunpack.c.l.bf16 %v306_v28  ;;  %v308_v46 = vld [vmem:[%s1165_s7] sm:$0xf]  ;;  %v765_v2 = vunpack.c.l.bf16 %v771_v56  ;;  %vm638_vm9 = vcmask 195584  }
  0x2e   :  { %798 = vmatmul.mubr.msk.f32.vlgmr.msra.gmra.mxu0 %vm121_vm2, %v116_v7  ;;  %807 = vmatprep.subr.mxu0 %v972_v0  ;;  %v107_v40 = vrot.slane %v103_v37, %v1101_v38  ;;  %v114_v43 = vrot.slane %v110_v39, %v1101_v38  ;;  %v309_v47 = vunpack.c.l.bf16 %v308_v46  ;;  %v760_v3 = vld [vmem:[%s1168_s10] sm:$0xff]  }
  0x2f   :  { %809 = vmatprep.mubr.msk.f32.mxu0 %vm973_vm0, %v972_v0  ;;  %803 = vmatpush3.msra.mxu1 %v210_v18  ;;  %v762_v4 = vunpack.c.h.bf16 %v760_v3  ;;  %v761_v5 = vunpack.c.l.bf16 %v760_v3  ;;  %v471_v16 = vld [vmem:[%s1169_s11] sm:$0x1] }
  0x30   :  { %812 = vmatprep.subr.mxu1 %v972_v0  ;;  %808 = vmatpush3.msra.mxu0 %v309_v47  ;;  %v472_v17 = vunpack.c.l.bf16 %v471_v16 }
  0x31   :  { %817 = vmatprep.subr.mxu0 %v972_v0 }
  0x32   :  { %v476_v18 = vrot.slane %v472_v17, %v1101_v38 }
  0xee   :  { %v195_v9 = vpop.f32.mrf.mxu0 }
  0xef   :  { %v199_v10 = vmax.f32 %v195_v9, 1e-08 }
  0xf0   :  { %v799_v12 = vpop.f32.mrf.mxu0 }
  0xf1   :  { %v201_v13 = vsel %vm200_vm3, %v199_v10, 0.0 }
  0xf2   :  { %202 = vadd.xlane.f32.xlu0 %v201_v13 }
  0xf6   :  { %89 = vadd.xlane.f32.xlu0 %v88_v14  ;;  %v557_v14 = vld [vmem:[%s1170_s12] sm:$0xf] }
  0xf7   :  { %v558_v15 = vunpack.c.l.bf16 %v557_v14 }
 0x17b   :  { %v203_v19 = vpop.xlane.xlu0 %202 }
 0x17c   :  { %v205_v20 = vmul.f32 0.25, %v203_v19 }
 0x17e   :  { %851 = vrsqrt.f32 %v205_v20 }
 0x17f   :  { %v90_v21 = vpop.xlane.xlu0 %89 }
 0x180   :  { %v92_v22 = vmul.f32 0.125, %v90_v21 }
 0x182   :  { %v93_v23 = vsub.f32 %v84_v11, %v92_v22 }
 0x184   :  { %v94_v24 = vmul.f32 %v93_v23, %v93_v23 }
 0x186   :  { %v95_v25 = vsel %vm87_vm4, %v94_v24, 0.0 }
 0x187   :  { %96 = vadd.xlane.f32.xlu1 %v95_v25  ;;  %v634_v25 = vld [vmem:[%s1167_s9 + $0x8] sm:$0xf] }
 0x18b   :  { %v852_v26 = vpop.eup %851 }
 0x18c   :  { %v207_v27 = vmul.f32 %v852_v26, %v86_v6  ;;  %v456_v6 = vld [vmem:[%s1166_s8] sm:$0x1] }
 0x18d   :  { %v457_v7 = vunpack.c.l.bf16 %v456_v6  ;;  %v768_v26 = vld [vmem:[%s1167_s9] sm:$0xff]   ;;  %s976_s9 = smov [#allocation8]  }
 0x18e   :  { %805 = vmatmul.mubr.msk.f32.vlgmr.msra.gmra.mxu1 %vm121_vm2, %v207_v27  ;;  %v637_v27 = vunpack.c.l.bf16 %v634_v25  ;;  %s725_s11 = sshll.u32 %s976_s9, 4  ;;  %s726_s11 = int_to_ptr.vmem [resolvable:$true] %s725_s11 }
 0x18f   :  { %814 = vmatprep.mubr.msk.f32.mxu1 %vm973_vm0, %v972_v0  ;;  %813 = vmatpush3.msra.mxu1 %v307_v29  ;;  %v461_v8 = vrot.slane %v457_v7, %v1101_v38  ;;  %v770_v29 = vunpack.c.h.bf16 %v768_v26  ;;  %s921_s30 = scalar_lea.vmem %s726_s11, 64  ;;  %p926_p2 = scmp.lt.s32.totalorder %s726_s11, %s726_s11 }
 0x190   :  { %828 = vmatprep.subr.mxu1 %v972_v0  ;;  %p922_p1 = scmp.ne.s32.totalorder %s726_s11, %s921_s30  ;;  %p927_p3 = scmp.lt.s32.totalorder %s921_s30, %s921_s30 }
 0x192   :  { %p928_p4 = por %p927_p3, %p926_p2 }
 0x194   :  { %p929_p5 = pnand %p928_p4, %p922_p1 }
 0x210   :  { %v97_v30 = vpop.xlane.xlu1 %96 }
 0x211   :  { %v98_v31 = vmul.f32 0.125, %v97_v30  ;;  %v769_v30 = vunpack.c.l.bf16 %v768_v26 }
 0x213   :  { %v99_v32 = vadd.f32 1e-05, %v98_v31 }
 0x215   :  { %853 = vrsqrt.f32 %v99_v32 }
 0x222   :  { %v854_v41 = vpop.eup %853 }
 0x223   :  { %v101_v42 = vmul.f32 %v854_v41, %v93_v23 }
 0x225   :  { %v108_v44 = vmul.f32 %v107_v40, %v101_v42 }
 0x227   :  { %v115_v45 = vadd.f32 %v114_v43, %v108_v44 }
 0x229   :  { %815 = vmatmul.mubr.msk.f32.vlgmr.msra.gmra.mxu1 %vm87_vm4, %v115_v45 }
 0x22a   :  { %830 = vmatprep.mubr.msk.f32.mxu1 %vm973_vm0, %v972_v0  ;;  %829 = vmatpush3.msra.mxu1 %v558_v15 }
 0x22b   :  { %833 = vmatprep.subr.mxu1 %v972_v0 }
 0x24e   :  { %v1111_v48 = vpop.f32.mrf.mxu1 }
 0x24f   :  { %v288_v49 = vmul.f32 %v1111_v48, %v1111_v48 }
 0x250   :  { %v806_v50 = vpop.f32.mrf.mxu1 }
 0x251   :  { %294 = vrot.lane.b32.xlu0 %v288_v49, %s974_s21  ;;  %290 = vrot.lane.b32.xlu1 %v288_v49, %s975_s22 }
 0x2c3   :  { %v291_v51 = vpop.permute.xlu1 %290  ;;  %v295_v53 = vpop.permute.xlu0 %294 }
 0x2c4   :  { %v293_v52 = vadd.f32 %v291_v51, %v288_v49 }
 0x2c6   :  { %v297_v54 = vadd.f32 %v295_v53, %v293_v52 }
 0x2c8   :  { %v298_v55 = vadd.f32 1e-08, %v297_v54 }
 0x2ca   :  { %855 = vrsqrt.f32 %v298_v55  ;;  %vm301_vm5 = vcmp.eq.f32.partialorder %v298_v55, inf  ;;  %v304_v59 = vand.u32 2147483648, %v298_v55  ;;  %vm303_vm6 = vcmp.eq.f32.partialorder %v298_v55, 0.0 }
 0x2d7   :  { %v856_v57 = vpop.eup %855 }
 0x2d8   :  { %v300_v58 = vmul.f32 %v856_v57, %v298_v55 }
 0x2da   :  { %v302_v61 = vsel %vm301_vm5, %v298_v55, %v300_v58 }
 0x2db   :  { %v305_v62 = vsel %vm303_vm6, %v304_v59, %v302_v61 }
 0x2dc   :  { %810 = vmatmul.mubr.msk.f32.vlgmr.msra.gmra.mxu0 %vm87_vm4, %v305_v62 }
 0x2dd   :  { %818 = vmatpush3.msra.mxu0 %v766_v60  ;;  %825 = vmatprep.mubr.msk.f32.mxu0 %vm973_vm0, %v972_v0 }
 0x2de   :  { %819 = vmatprep.subr.mxu0 %v972_v0 }
 0x2df   :  { %820 = vmatpush3.msra.mxu0 %v765_v2 }
 0x2e0   :  { %821 = vmatprep.subr.mxu0 %v972_v0 }
 0x2e1   :  { %822 = vmatpush3.msra.mxu0 %v762_v4 }
 0x2e2   :  { %823 = vmatprep.subr.mxu0 %v972_v0 }
 0x2e3   :  { %824 = vmatpush3.msra.mxu0 %v761_v5 }
 0x2e9   :  { %v452_v63 = vpop.f32.mrf.mxu1 }
 0x2eb   :  { %v816_v1 = vpop.f32.mrf.mxu1 }
 0x39c   :  { %v379_v9 = vpop.f32.mrf.mxu0 }
 0x39d   :  { %v453_v10 = vadd.f32 %v452_v63, %v379_v9 }
 0x39e   :  { %v811_v11 = vpop.f32.mrf.mxu0 }
 0x39f   :  { %v462_v12 = vadd.f32 %v461_v8, %v453_v10 }
 0x3a1   :  { %v713_v13 = vpack.c.bf16 %v462_v12, %v462_v12  ;;  %826 = vmatmul.mubr.msk.f32.vlgmr.msra.gmra.mxu0 %vm477_vm7, %v462_v12 }
 0x3a3   :  { %715 = vst.msk [vmem:[#allocation8] sm:$0xf] %vm714_vm8, %v713_v13 }
 0x461   :  { %v547_v19 = vpop.f32.mrf.mxu0 }
 0x462   :  { %v548_v20 = vadd.f32 %v547_v19, %v476_v18 }
 0x463   :  { %v827_v21 = vpop.f32.mrf.mxu0 }
 0x464   :  { %v756_v22 = vmul.f32 -1.442695, %v548_v20 }
 0x466   :  { %857 = vpow2.f32 %v756_v22 }
 0x473   :  { %v858_v23 = vpop.eup %857 }
 0x474   :  { %v554_v24 = vadd.f32 1.0, %v858_v23 }
 0x476   :  { %859 = vrcp.f32 %v554_v24 }
 0x483   :  { %v860_v28 = vpop.eup %859 }
 0x484   :  { %831 = vmatmul.mubr.msk.f32.vlgmr.msra.gmra.mxu1 %vm87_vm4, %v860_v28 }
 0x485   :  { %834 = vmatpush3.msra.mxu1 %v637_v27  ;;  %839 = vmatprep.mubr.msk.f32.mxu1 %vm973_vm0, %v972_v0 }
 0x486   :  { %835 = vmatprep.subr.mxu1 %v972_v0 }
 0x487   :  { %836 = vmatpush3.msra.mxu1 %v770_v29 }
 0x488   :  { %837 = vmatprep.subr.mxu1 %v972_v0 }
 0x489   :  { %838 = vmatpush3.msra.mxu1 %v769_v30 }
 0x48a   :  { %840 = vmatmul.mubr.msk.f32.vlgmr.msra.gmra.mxu1 %vm638_vm9, %v1111_v48 }
 0x48b   :  { %932 = shalt.err (!%p929_p5)
}
 0x48c   :  { %728 = dma.vmem_to_hbm [thread:$0]  %s726_s11, 64, %s1171_s13, [#allocation4]   ;;  %vm717_vm10 = vcmask 191488  }
 0x48d   :  { %s977_s16 = smov [#allocation9]  }
 0x48e   :  { %s735_s17 = sshll.u32 %s977_s16, 4  ;;  %s736_s17 = int_to_ptr.vmem [resolvable:$true] %s735_s17 }
 0x48f   :  { %s941_s18 = scalar_lea.vmem %s736_s17, 64  ;;  %p946_p7 = scmp.lt.s32.totalorder %s736_s17, %s736_s17 }
 0x490   :  { %p942_p6 = scmp.ne.s32.totalorder %s736_s17, %s941_s18  ;;  %p947_p8 = scmp.lt.s32.totalorder %s941_s18, %s941_s18 }
 0x492   :  { %p948_p9 = por %p947_p8, %p946_p7 }
 0x494   :  { %p949_p10 = pnand %p948_p9, %p942_p6 }
 0x544   :  { %v628_v31 = vpop.f32.mrf.mxu1 }
 0x546   :  { %v832_v32 = vpop.f32.mrf.mxu1 }
 0x54a   :  { %v708_v0 = vpop.f32.mrf.mxu1 }
 0x54b   :  { %v712_v33 = vmul.f32 %v708_v0, %v628_v31 }
 0x54c   :  { %v841_v34 = vpop.f32.mrf.mxu1 }
 0x54d   :  { %v716_v35 = vpack.c.bf16 %v712_v33, %v712_v33 }
 0x54f   :  { %718 = vst.msk [vmem:[#allocation9] sm:$0xf] %vm717_vm10, %v716_v35 }
 0x550   :  { %952 = shalt.err (!%p949_p10)
}
 0x551   :  { %738 = dma.vmem_to_hbm [thread:$0]  %s736_s17, 64, %s1172_s14, [#allocation10]  }
 0x552   :  { %965 = dma.done.wait [#allocation4], 64  }
 0x553   :  { %966 = vsyncadd [#allocation4], 4294967232 }
 0x554   :  { %967 = dma.done.wait [#allocation10], 64  }
 0x555   :  { %968 = vsyncadd [#allocation10], 4294967232 }
 0x556   :  { %745 = vsyncpa [#allocation3], 1 }
 0x557   :  { %746 = vsyncpa [#allocation6], 1 }
 0x558   :  { %747 = vsyncpa [#allocation4], 1 }
 0x559   :  { %748 = vsyncpa [#allocation10], 1 }

</bundles_post_ra>
